<compile_context>
chip_gen: v6e
topology: v6e:2x2x1
jax: 0.10.0
libtpu: 0.0.40
codegen_flags: <defaults>
</compile_context>

<pallas_src>
import functools

import jax
import jax.numpy as jnp
from jax import lax
from jax.experimental import pallas as pl
from jax.experimental.pallas import tpu as pltpu

NEG_SLOPE = 0.01                     # nn.LeakyReLU() default negative_slope
VMEM_LIMIT = 32 * 1024 * 1024        # safe on v5e/v6e/v7x; raises v5e's 16 MiB default


def _leaky(y):
    return jnp.where(y > 0, y, NEG_SLOPE * y)


def _round_up(x, m):
    return ((x + m - 1) // m) * m


def _pick_tile(dim, cap=512):
    """Largest tile in {cap, 256, 128} dividing `dim` (dim is a multiple of 128)."""
    for t in (cap, 256, 128):
        if t <= cap and dim % t == 0:
            return t
    return 128


# ----------------------------------------------------------------------------
# Pallas kernel: tiled  y = x @ w + b  (+ optional LeakyReLU)
# ----------------------------------------------------------------------------
def _linear_kernel(x_ref, w_ref, b_ref, o_ref, acc_ref, *, apply_leaky):
    k = pl.program_id(2)

    @pl.when(k == 0)
    def _():
        acc_ref[...] = jnp.zeros_like(acc_ref)

    # bf16 operands, f32 accumulation on the MXU.
    acc_ref[...] += jnp.dot(x_ref[...], w_ref[...],
                            preferred_element_type=jnp.float32)

    @pl.when(k == pl.num_programs(2) - 1)
    def _():
        y = acc_ref[...] + b_ref[...]          # f32 epilogue (v5e-safe)
        if apply_leaky:
            y = _leaky(y)
        o_ref[...] = y.astype(o_ref.dtype)


def pallas_linear(x, w_kn, b_1n, *, n_out, apply_leaky):
    """x: (M, K) float.  w_kn: (Kp, Np) bf16, pre-transposed + pre-padded.
    b_1n: (1, Np) f32, pre-padded.  Returns (M, n_out) f32."""
    M, K = x.shape
    Kp, Np = w_kn.shape

    Mp = _round_up(M, 8)
    if Mp > 256:
        Mp = _round_up(Mp, 256)
        tm = 256
    else:
        tm = Mp                                 # don't tile M below the batch
    tn = _pick_tile(Np)
    tk = _pick_tile(Kp)

    xp = x.astype(jnp.bfloat16)
    if (Mp, Kp) != (M, K):
        xp = jnp.pad(xp, ((0, Mp - M), (0, Kp - K)))

    grid = (Mp // tm, Np // tn, Kp // tk)       # reduction axis (K) last
    kernel = functools.partial(_linear_kernel, apply_leaky=apply_leaky)

    out = pl.pallas_call(
        kernel,
        out_shape=jax.ShapeDtypeStruct((Mp, Np), jnp.float32),
        grid_spec=pltpu.PrefetchScalarGridSpec(
            num_scalar_prefetch=0,
            grid=grid,
            in_specs=[
                pl.BlockSpec((tm, tk), lambda i, j, k: (i, k)),
                pl.BlockSpec((tk, tn), lambda i, j, k: (k, j)),
                pl.BlockSpec((1, tn), lambda i, j, k: (0, j)),
            ],
            out_specs=pl.BlockSpec((tm, tn), lambda i, j, k: (i, j)),
            scratch_shapes=[pltpu.VMEM((tm, tn), jnp.float32)],
        ),
        compiler_params=pltpu.CompilerParams(
            dimension_semantics=("parallel", "parallel", "arbitrary"),
            vmem_limit_bytes=VMEM_LIMIT,
        ),
    )(xp, w_kn, b_1n)
    return out[:M, :n_out]


# ----------------------------------------------------------------------------
# Pallas kernel: fused 3-layer MLP head
#   h1  = LeakyReLU(flat @ w1 + b1)     (K-tiled, f32 VMEM accumulator)
#   lin = LeakyReLU(h1 @ w2 + b2)       (epilogue, weights resident in VMEM)
#   out = lin @ w3 + b3                 (epilogue)
# ----------------------------------------------------------------------------
def _mlp_head_kernel(x_ref, w1_ref, b1_ref, w2_ref, b2_ref, w3_ref, b3_ref,
                     lin_ref, logits_ref, h1_acc):
    k = pl.program_id(0)

    @pl.when(k == 0)
    def _():
        h1_acc[...] = jnp.zeros_like(h1_acc)

    h1_acc[...] += jnp.dot(x_ref[...], w1_ref[...],
                           preferred_element_type=jnp.float32)

    @pl.when(k == pl.num_programs(0) - 1)
    def _():
        h1 = _leaky(h1_acc[...] + b1_ref[...])
        h2 = jnp.dot(h1.astype(w2_ref.dtype), w2_ref[...],
                     preferred_element_type=jnp.float32) + b2_ref[...]
        lin = _leaky(h2)
        lin_ref[...] = lin.astype(lin_ref.dtype)
        logits = jnp.dot(lin.astype(w3_ref.dtype), w3_ref[...],
                         preferred_element_type=jnp.float32) + b3_ref[...]
        logits_ref[...] = logits.astype(logits_ref.dtype)


def pallas_mlp_head(flat, kp):
    """flat: (M, K1) float.  Returns padded (lin, logits) as f32."""
    M, K = flat.shape
    K1p, H1p = kp["w1"].shape
    _, H2p = kp["w2"].shape
    _, NCp = kp["w3"].shape

    xp = flat.astype(jnp.bfloat16)
    if K1p != K:
        xp = jnp.pad(xp, ((0, 0), (0, K1p - K)))

    tk = _pick_tile(K1p)
    grid = (K1p // tk,)

    lin, logits = pl.pallas_call(
        _mlp_head_kernel,
        out_shape=(jax.ShapeDtypeStruct((M, H2p), jnp.float32),
                   jax.ShapeDtypeStruct((M, NCp), jnp.float32)),
        grid_spec=pltpu.PrefetchScalarGridSpec(
            num_scalar_prefetch=0,
            grid=grid,
            in_specs=[
                pl.BlockSpec((M, tk), lambda k: (0, k)),     # activations
                pl.BlockSpec((tk, H1p), lambda k: (k, 0)),   # w1 (K-tiled)
                pl.BlockSpec((1, H1p), lambda k: (0, 0)),    # b1
                pl.BlockSpec((H1p, H2p), lambda k: (0, 0)),  # w2 (resident)
                pl.BlockSpec((1, H2p), lambda k: (0, 0)),    # b2
                pl.BlockSpec((H2p, NCp), lambda k: (0, 0)),  # w3 (resident)
                pl.BlockSpec((1, NCp), lambda k: (0, 0)),    # b3
            ],
            out_specs=[
                pl.BlockSpec((M, H2p), lambda k: (0, 0)),    # lin
                pl.BlockSpec((M, NCp), lambda k: (0, 0)),    # logits (padded to 128 lanes)
            ],
            scratch_shapes=[pltpu.VMEM((M, H1p), jnp.float32)],
        ),
        compiler_params=pltpu.CompilerParams(
            dimension_semantics=("arbitrary",),
            vmem_limit_bytes=VMEM_LIMIT,
        ),
    )(xp, kp["w1"], kp["b1"], kp["w2"], kp["b2"], kp["w3"], kp["b3"])
    return lin, logits


# ----------------------------------------------------------------------------
# ConvNet forward
# ----------------------------------------------------------------------------
def convnet_forward(x, kp):
    """x: (N, C, H, W) f32.  Returns (lin, logits) per the PyTorch module."""
    B = x.shape[0]
    # Stand-in backbone: Conv2d(3x3, stride=2, pad=1) + LeakyReLU via im2col.
    # Run in NHWC so no large feature-map transposes are materialized.
    x_nhwc = jnp.transpose(x, (0, 2, 3, 1))            # tiny one-time input layout
    patches = lax.conv_general_dilated_patches(
        x_nhwc,
        filter_shape=(3, 3),
        window_strides=(2, 2),
        padding=((1, 1), (1, 1)),
        dimension_numbers=("NHWC", "HWIO", "NHWC"),
    )                                                  # (N, OH, OW, C*KH*KW), (C,KH,KW) order
    _, OH, OW, CK = patches.shape
    pm = patches.reshape(B * OH * OW, CK)
    feat = pallas_linear(pm, kp["conv_w"], kp["conv_b"],
                         n_out=kp["conv_oc"], apply_leaky=True)
    flat = feat.reshape(B, OH * OW * kp["conv_oc"])    # NHWC flatten, no transpose

    # Fused linear1+LeakyReLU -> linear2+LeakyReLU(=lin) -> linear3.
    lin_p, logits_p = pallas_mlp_head(flat, kp)
    return lin_p[:, :kp["h2"]], logits_p[:, :kp["num_classes"]]


# ----------------------------------------------------------------------------
# Parameter handling
# ----------------------------------------------------------------------------
def init_params(key, *, c_in, c_feat, f_in, h1, h2, num_classes):
    ks = jax.random.split(key, 8)
    # PyTorch nn.Linear stores weight as (out_features, in_features).
    return {
        "conv_w": 0.1 * jax.random.normal(ks[0], (c_feat, c_in, 3, 3), jnp.float32),
        "conv_b": 0.1 * jax.random.normal(ks[1], (c_feat,), jnp.float32),
        "w1": 0.05 * jax.random.normal(ks[2], (h1, f_in), jnp.float32),
        "b1": 0.05 * jax.random.normal(ks[3], (h1,), jnp.float32),
        "w2": 0.05 * jax.random.normal(ks[4], (h2, h1), jnp.float32),
        "b2": 0.05 * jax.random.normal(ks[5], (h2,), jnp.float32),
        "w3": 0.05 * jax.random.normal(ks[6], (num_classes, h2), jnp.float32),
        "b3": 0.05 * jax.random.normal(ks[7], (num_classes,), jnp.float32),
    }


def prepare_params(params):
    """One-time weight layout prep: (out,in) -> (K,N), pad K/N to multiples of
    128 lanes (zero pad, exact), cast matmul operands to bf16; biases f32."""
    def prep_w(w_out_in):
        w = jnp.asarray(w_out_in, jnp.float32).T        # (K, N)
        K, N = w.shape
        Kp, Np = _round_up(K, 128), _round_up(N, 128)
        w = jnp.pad(w, ((0, Kp - K), (0, Np - N)))
        return w.astype(jnp.bfloat16)

    def prep_b(b, np_):
        b = jnp.asarray(b, jnp.float32)
        return jnp.pad(b, ((0, np_ - b.shape[0]),)).reshape(1, np_)

    cw = params["conv_w"]
    oc, c, kh, kw = cw.shape
    kp = {
        "conv_w": prep_w(cw.reshape(oc, c * kh * kw)),
        "w1": prep_w(params["w1"]),
        "w2": prep_w(params["w2"]),
        "w3": prep_w(params["w3"]),
        "conv_oc": int(oc),
        "h2": int(params["w2"].shape[0]),
        "num_classes": int(params["w3"].shape[0]),
    }
    kp["conv_b"] = prep_b(params["conv_b"], kp["conv_w"].shape[1])
    kp["b1"] = prep_b(params["b1"], kp["w1"].shape[1])
    kp["b2"] = prep_b(params["b2"], kp["w2"].shape[1])
    kp["b3"] = prep_b(params["b3"], kp["w3"].shape[1])
    return kp


# ----------------------------------------------------------------------------
# Pure-JAX f32 reference (same math, same NHWC feature ordering)
# ----------------------------------------------------------------------------
def reference_forward(x, params):
    y = lax.conv_general_dilated(
        x, params["conv_w"], window_strides=(2, 2), padding=((1, 1), (1, 1)),
        dimension_numbers=("NCHW", "OIHW", "NCHW"))
    y = _leaky(y + params["conv_b"][None, :, None, None])
    flat = jnp.transpose(y, (0, 2, 3, 1)).reshape(y.shape[0], -1)
    h1 = _leaky(flat @ params["w1"].T + params["b1"])
    lin = _leaky(h1 @ params["w2"].T + params["b2"])
    logits = lin @ params["w3"].T + params["b3"]
    return lin, logits


if __name__ == "__main__":
    key = jax.random.PRNGKey(0)
    k_x, k_p = jax.random.split(key)

    # Small shapes consistent with the module's forward (scaled-down dims):
    B, C, H, W = 2, 4, 16, 16
    C_FEAT = 16                         # stand-in backbone output channels
    OH = OW = H // 2                    # stride-2 conv, pad 1
    F_IN = C_FEAT * OH * OW             # 1024  (scaled-down 94080)
    H1, H2, NUM_CLASSES = 256, 128, 5   # scaled-down 4096 / 512 / num_classes

    x = jax.random.normal(k_x, (B, C, H, W), jnp.float32)
    params = init_params(k_p, c_in=C, c_feat=C_FEAT, f_in=F_IN,
                         h1=H1, h2=H2, num_classes=NUM_CLASSES)
    kparams = prepare_params(params)    # one-time transpose/pad/bf16 cast

    lin, logits = convnet_forward(x, kparams)
    jax.block_until_ready((lin, logits))
    assert lin.shape == (B, H2) and logits.shape == (B, NUM_CLASSES)

    # Validate against a pure-JAX f32 reference (bf16 weight streaming => tolerance).
    lin_ref, logits_ref = reference_forward(x, params)
    assert bool(jnp.allclose(lin, lin_ref, atol=5e-2, rtol=5e-2)), "lin mismatch"
    assert bool(jnp.allclose(logits, logits_ref, atol=5e-2, rtol=5e-2)), "logits mismatch"

    print("KERNEL_OK")
</pallas_src>

<mosaic_0001>
module attributes {stable_mosaic.version = 11 : i64} {
  func.func @_linear_kernel(%arg0: i32, %arg1: i32, %arg2: i32, %arg3: memref<128x128xbf16, #tpu.memory_space<vmem>>, %arg4: memref<128x128xbf16, #tpu.memory_space<vmem>>, %arg5: memref<1x128xf32, #tpu.memory_space<vmem>>, %arg6: memref<128x128xf32, #tpu.memory_space<vmem>>, %arg7: memref<128x128xf32, #tpu.memory_space<vmem>>) attributes {dimension_semantics = [#tpu.dimension_semantics<parallel>, #tpu.dimension_semantics<parallel>, #tpu.dimension_semantics<arbitrary>], iteration_bounds = array<i64: 1, 1, 1>, scalar_prefetch = 0 : i64, scratch_operands = 1 : i64, tpu.core_type = #tpu.core_type<tc>, window_params = [{transform_indices = @transform_0, window_bounds = array<i64: 128, 128>}, {transform_indices = @transform_1, window_bounds = array<i64: 128, 128>}, {transform_indices = @transform_2, window_bounds = array<i64: 1, 128>}, {transform_indices = @transform_3, window_bounds = array<i64: 128, 128>}]} {
    %c0_i32 = arith.constant 0 : i32
    %0 = arith.cmpi eq, %arg2, %c0_i32 : i32
    %1 = arith.extui %0 : i1 to i32
    %c0_i32_0 = arith.constant 0 : i32
    %2 = arith.cmpi ne, %1, %c0_i32_0 : i32
    scf.if %2 {
      %cst_10 = arith.constant 0.000000e+00 : f32
      %12 = vector.broadcast %cst_10 : f32 to vector<128x128xf32>
      %c0_11 = arith.constant 0 : index
      %c0_12 = arith.constant 0 : index
      %13 = vector.load %arg7[%c0_11, %c0_12] : memref<128x128xf32, #tpu.memory_space<vmem>>, vector<128x128xf32>
      tpu.vector_store %arg7[%c0_11, %c0_12], %12 {strides = array<i32>} : memref<128x128xf32, #tpu.memory_space<vmem>>, vector<128x128xf32>,
    } else {
    }
    %c0 = arith.constant 0 : index
    %c0_1 = arith.constant 0 : index
    %3 = vector.load %arg7[%c0, %c0_1] : memref<128x128xf32, #tpu.memory_space<vmem>>, vector<128x128xf32>
    %c0_2 = arith.constant 0 : index
    %c0_3 = arith.constant 0 : index
    %4 = vector.load %arg3[%c0_2, %c0_3] : memref<128x128xbf16, #tpu.memory_space<vmem>>, vector<128x128xbf16>
    %c0_4 = arith.constant 0 : index
    %c0_5 = arith.constant 0 : index
    %5 = vector.load %arg4[%c0_4, %c0_5] : memref<128x128xbf16, #tpu.memory_space<vmem>>, vector<128x128xbf16>
    %cst = arith.constant dense<0.000000e+00> : vector<128x128xf32>
    %6 = tpu.matmul %4, %5, %cst {dimension_numbers = #tpu.dot_dimension_numbers<[1], [0], [0], [1], [0, 0, 1, 1], [], []>} : vector<128x128xbf16>, vector<128x128xbf16>, vector<128x128xf32> -> vector<128x128xf32>
    %7 = arith.addf %3, %6 : vector<128x128xf32>
    %c0_6 = arith.constant 0 : index
    %c0_7 = arith.constant 0 : index
    %8 = vector.load %arg7[%c0_6, %c0_7] : memref<128x128xf32, #tpu.memory_space<vmem>>, vector<128x128xf32>
    tpu.vector_store %arg7[%c0_6, %c0_7], %7 {strides = array<i32>} : memref<128x128xf32, #tpu.memory_space<vmem>>, vector<128x128xf32>,
    %c0_i32_8 = arith.constant 0 : i32
    %9 = arith.cmpi eq, %arg2, %c0_i32_8 : i32
    %10 = arith.extui %9 : i1 to i32
    %c0_i32_9 = arith.constant 0 : i32
    %11 = arith.cmpi ne, %10, %c0_i32_9 : i32
    scf.if %11 {
      %c0_10 = arith.constant 0 : index
      %c0_11 = arith.constant 0 : index
      %12 = vector.load %arg7[%c0_10, %c0_11] : memref<128x128xf32, #tpu.memory_space<vmem>>, vector<128x128xf32>
      %c0_12 = arith.constant 0 : index
      %c0_13 = arith.constant 0 : index
      %13 = vector.load %arg5[%c0_12, %c0_13] : memref<1x128xf32, #tpu.memory_space<vmem>>, vector<1x128xf32>
      %14 = vector.broadcast %13 : vector<1x128xf32> to vector<128x128xf32>
      %15 = arith.addf %12, %14 : vector<128x128xf32>
      %cst_14 = arith.constant 0.000000e+00 : f32
      %16 = vector.broadcast %cst_14 : f32 to vector<128x128xf32>
      %17 = arith.cmpf ogt, %15, %16 : vector<128x128xf32>
      %cst_15 = arith.constant 0.00999999977 : f32
      %18 = vector.broadcast %cst_15 : f32 to vector<128x128xf32>
      %19 = arith.mulf %18, %15 : vector<128x128xf32>
      %20 = arith.select %17, %15, %19 : vector<128x128xi1>, vector<128x128xf32>
      %c0_16 = arith.constant 0 : index
      %c0_17 = arith.constant 0 : index
      %21 = vector.load %arg6[%c0_16, %c0_17] : memref<128x128xf32, #tpu.memory_space<vmem>>, vector<128x128xf32>
      tpu.vector_store %arg6[%c0_16, %c0_17], %20 {strides = array<i32>} : memref<128x128xf32, #tpu.memory_space<vmem>>, vector<128x128xf32>,
    } else {
    }
    return
  }
  func.func @transform_0(%arg0: i32, %arg1: i32, %arg2: i32) -> (i32, i32) {
    %c0_i32 = arith.constant 0 : i32
    return %arg0, %arg2 : i32, i32
  }
  func.func @transform_1(%arg0: i32, %arg1: i32, %arg2: i32) -> (i32, i32) {
    %c0_i32 = arith.constant 0 : i32
    return %arg2, %arg1 : i32, i32
  }
  func.func @transform_2(%arg0: i32, %arg1: i32, %arg2: i32) -> (i32, i32) {
    %c0_i32 = arith.constant 0 : i32
    %c0_i32_0 = arith.constant 0 : i32
    return %c0_i32, %arg1 : i32, i32
  }
  func.func @transform_3(%arg0: i32, %arg1: i32, %arg2: i32) -> (i32, i32) {
    %c0_i32 = arith.constant 0 : i32
    return %arg0, %arg1 : i32, i32
  }
}

</mosaic_0001>

<bundles_post_ra>
// kernel: tpu_custom_call.1
= control target key start
LH: loop header
LB: loop body
LE: loop exit
PB: predicated region body
PF: predicated region fallthrough
CT: control target
= control target key end

     0   :  { %8 = vsyncpa [#allocation4], 0  ;;  %s688_s0 = inlined_call_operand.hbm [shape: bf16[128,128], index: 0, kind: input, shape index: {}]   ;;  %s689_s1 = inlined_call_operand.hbm [shape: bf16[128,128], index: 1, kind: input, shape index: {}]   ;;  %s690_s2 = inlined_call_operand.vmem [shape: f32[1,128], index: 2, kind: input, shape index: {}]   ;;  %s691_s3 = inlined_call_operand.hbm [shape: f32[128,128], index: 3, kind: output, shape index: {}]  }
   0x1   :  { %9 = vsyncpa [#allocation7], 0 }
   0x2   :  { %10 = vsyncpa [#allocation5], 0  ;;  %s631_s12 = smov [#allocation3]  }
   0x3   :  { %s16_s13 = sshll.u32 %s631_s12, 4  ;;  %s17_s13 = int_to_ptr.vmem [resolvable:$true] %s16_s13 }
   0x4   :  { %s573_s14 = scalar_lea.vmem %s17_s13, 1024  ;;  %p578_p1 = scmp.lt.s32.totalorder %s17_s13, %s17_s13 }
   0x5   :  { %p574_p0 = scmp.ne.s32.totalorder %s17_s13, %s573_s14  ;;  %p579_p2 = scmp.lt.s32.totalorder %s573_s14, %s573_s14 }
   0x7   :  { %p580_p3 = por %p579_p2, %p578_p1 }
   0x9   :  { %p581_p4 = pnand %p580_p3, %p574_p0 }
   0xb   :  { %584 = shalt.err (!%p581_p4)
}
   0xc   :  { %s632_s15 = smov 64   ;;  %s633_s16 = smov 4  }
   0xd   :  { %22 = dma.hbm_to_vmem [thread:$0]  %s688_s0, 1024, %s17_s13, [#allocation4], %s632_s15, %s632_s15, %s633_s16  }
   0xe   :  { %s634_s19 = smov [#allocation6]  }
   0xf   :  { %s28_s20 = sshll.u32 %s634_s19, 4  ;;  %s29_s20 = int_to_ptr.vmem [resolvable:$true] %s28_s20 }
  0x10   :  { %s593_s21 = scalar_lea.vmem %s29_s20, 1024  ;;  %p598_p6 = scmp.lt.s32.totalorder %s29_s20, %s29_s20 }
  0x11   :  { %p594_p5 = scmp.ne.s32.totalorder %s29_s20, %s593_s21  ;;  %p599_p7 = scmp.lt.s32.totalorder %s593_s21, %s593_s21 }
  0x13   :  { %p600_p8 = por %p599_p7, %p598_p6 }
  0x15   :  { %p601_p9 = pnand %p600_p8, %p594_p5 }
  0x17   :  { %604 = shalt.err (!%p601_p9)
}
  0x18   :  { %34 = dma.hbm_to_vmem [thread:$0]  %s689_s1, 1024, %s29_s20, [#allocation7], %s632_s15, %s632_s15, %s633_s16  }
  0x19   :  { %625 = dma.done.wait [#allocation4], 1024  }
  0x1a   :  { %626 = vsyncadd [#allocation4], 4294966272 }
  0x1b   :  { %627 = dma.done.wait [#allocation7], 1024  }
  0x1c   :  { %628 = vsyncadd [#allocation7], 4294966272  ;;  %v549_v0 = vld [vmem:[#allocation6 + $0x38] sm:$0xff]   ;;  %v550_v1 = vld [vmem:[#allocation6 + $0x30] sm:$0xff]  }
  0x1d   :  { %494 = vmatprep.subr.bf16.mxu0 %v549_v0  ;;  %526 = vmatprep.subr.bf16.mxu1 %v549_v0  ;;  %v551_v2 = vld [vmem:[#allocation6 + $0x28] sm:$0xff]   ;;  %v552_v3 = vld [vmem:[#allocation6 + $0x20] sm:$0xff]   ;;  %v553_v6 = vld [vmem:[#allocation6 + $0x18] sm:$0xff]  }
  0x1e   :  { %495 = vmatpush3.bf16.msra.mxu0 %v549_v0  ;;  %534 = vmatpush3.bf16.msra.mxu1 %v549_v0  ;;  %v557_v4 = vld [vmem:[#allocation3] sm:$0xff]   ;;  %v554_v7 = vld [vmem:[#allocation6 + $0x10] sm:$0xff]   ;;  %v555_v8 = vld [vmem:[#allocation6 + $0x8] sm:$0xff]  }
  0x1f   :  { %496 = vmatprep.subr.bf16.mxu0 %v550_v1  ;;  %527 = vmatprep.subr.bf16.mxu1 %v550_v1  ;;  %v558_v5 = vld [vmem:[#allocation3 + $0x20] sm:$0xff]   ;;  %v559_v10 = vld [vmem:[#allocation3 + $0x8] sm:$0xff]   ;;  %v561_v12 = vld [vmem:[#allocation3 + $0x10] sm:$0xff]  }
  0x20   :  { %510 = vmatprep.mubr.bf16.mxu0 %v557_v4  ;;  %518 = vmatprep.mubr.bf16.mxu1 %v558_v5  ;;  %v556_v9 = vld [vmem:[#allocation6] sm:$0xff]   ;;  %v560_v11 = vld [vmem:[#allocation3 + $0x28] sm:$0xff]   ;;  %v562_v13 = vld [vmem:[#allocation3 + $0x30] sm:$0xff]  }
  0x21   :  { %v563_v14 = vld [vmem:[#allocation3 + $0x18] sm:$0xff]   ;;  %v667_v16 = vld [vmem:[%s690_s2] ss:$0 sm:$0xff]  ;;  %s635_s2 = smov [#allocation8]  }
  0x22   :  { %497 = vmatpush3.bf16.msra.mxu0 %v550_v1  ;;  %535 = vmatpush3.bf16.msra.mxu1 %v550_v1  ;;  %v564_v15 = vld [vmem:[#allocation3 + $0x38] sm:$0xff]   ;;  %s448_s24 = sshll.u32 %s635_s2, 4  ;;  %s449_s24 = int_to_ptr.vmem [resolvable:$true] %s448_s24 }
  0x23   :  { %498 = vmatprep.subr.bf16.mxu0 %v551_v2  ;;  %528 = vmatprep.subr.bf16.mxu1 %v551_v2  ;;  %s605_s25 = scalar_lea.vmem %s449_s24, 2048  ;;  %p610_p11 = scmp.lt.s32.totalorder %s449_s24, %s449_s24 }
  0x24   :  { %p606_p10 = scmp.ne.s32.totalorder %s449_s24, %s605_s25  ;;  %p611_p12 = scmp.lt.s32.totalorder %s605_s25, %s605_s25 }
  0x26   :  { %499 = vmatpush3.bf16.msra.mxu0 %v551_v2  ;;  %536 = vmatpush3.bf16.msra.mxu1 %v551_v2  ;;  %p612_p13 = por %p611_p12, %p610_p11 }
  0x27   :  { %500 = vmatprep.subr.bf16.mxu0 %v552_v3  ;;  %529 = vmatprep.subr.bf16.mxu1 %v552_v3 }
  0x28   :  { %p613_p0 = pnand %p612_p13, %p606_p10 }
  0x2a   :  { %501 = vmatpush3.bf16.msra.mxu0 %v552_v3  ;;  %537 = vmatpush3.bf16.msra.mxu1 %v552_v3 }
  0x2b   :  { %502 = vmatprep.subr.bf16.mxu0 %v553_v6  ;;  %530 = vmatprep.subr.bf16.mxu1 %v553_v6 }
  0x2e   :  { %503 = vmatpush3.bf16.msra.mxu0 %v553_v6  ;;  %538 = vmatpush3.bf16.msra.mxu1 %v553_v6 }
  0x2f   :  { %504 = vmatprep.subr.bf16.mxu0 %v554_v7  ;;  %531 = vmatprep.subr.bf16.mxu1 %v554_v7 }
  0x32   :  { %505 = vmatpush3.bf16.msra.mxu0 %v554_v7  ;;  %539 = vmatpush3.bf16.msra.mxu1 %v554_v7 }
  0x33   :  { %506 = vmatprep.subr.bf16.mxu0 %v555_v8  ;;  %532 = vmatprep.subr.bf16.mxu1 %v555_v8 }
  0x36   :  { %507 = vmatpush3.bf16.msra.mxu0 %v555_v8  ;;  %540 = vmatpush3.bf16.msra.mxu1 %v555_v8 }
  0x37   :  { %508 = vmatprep.subr.bf16.mxu0 %v556_v9  ;;  %533 = vmatprep.subr.bf16.mxu1 %v556_v9 }
  0x3a   :  { %509 = vmatpush3.bf16.msra.mxu0 %v556_v9  ;;  %541 = vmatpush3.bf16.msra.mxu1 %v556_v9 }
  0x3d   :  { %511 = vmatmul.mubr.bf16.vlgmr.msra.gmra.mxu0 %v559_v10  ;;  %519 = vmatmul.mubr.bf16.vlgmr.msra.gmra.mxu1 %v560_v11 }
  0x3e   :  { %514 = vmatprep.mubr.bf16.mxu0 %v561_v12  ;;  %522 = vmatprep.mubr.bf16.mxu1 %v562_v13 }
  0x45   :  { %515 = vmatmul.mubr.bf16.gmra.mxu0 %v563_v14  ;;  %523 = vmatmul.mubr.bf16.gmra.mxu1 %v564_v15 }
  0xfd   :  { %v512_v17 = vpop.f32.mrf.mxu0  ;;  %v520_v18 = vpop.f32.mrf.mxu1 }
  0xfe   :  { %v365_v19 = vadd.f32 %v512_v17, %v667_v16  ;;  %v373_v20 = vadd.f32 %v520_v18, %v667_v16 }
  0xff   :  { %v242_v21 = vpop.f32.mrf.mxu0  ;;  %v274_v22 = vpop.f32.mrf.mxu1 }
 0x100   :  { %vm381_vm0 = vcmp.gt.f32.partialorder %v365_v19, 0.0  ;;  %v397_v23 = vmul.f32 0.01, %v365_v19  ;;  %vm389_vm1 = vcmp.gt.f32.partialorder %v373_v20, 0.0  ;;  %v405_v24 = vmul.f32 0.01, %v373_v20 }
 0x101   :  { %v363_v25 = vadd.f32 %v667_v16, %v242_v21  ;;  %v371_v26 = vadd.f32 %v667_v16, %v274_v22  ;;  %v513_v27 = vpop.f32.mrf.mxu0  ;;  %v521_v28 = vpop.f32.mrf.mxu1 }
 0x102   :  { %v413_v29 = vsel %vm381_vm0, %v365_v19, %v397_v23  ;;  %v421_v30 = vsel %vm389_vm1, %v373_v20, %v405_v24  ;;  %v366_v31 = vadd.f32 %v513_v27, %v667_v16  ;;  %v374_v32 = vadd.f32 %v521_v28, %v667_v16 }
 0x103   :  { %429 = vst [vmem:[#allocation8 + $0x10] sm:$0xff] %v413_v29  ;;  %437 = vst [vmem:[#allocation8 + $0x50] sm:$0xff] %v421_v30  ;;  %vm379_vm2 = vcmp.gt.f32.partialorder %v363_v25, 0.0  ;;  %v395_v33 = vmul.f32 0.01, %v363_v25  ;;  %vm387_vm3 = vcmp.gt.f32.partialorder %v371_v26, 0.0  ;;  %v245_v35 = vpop.f32.mrf.mxu0  ;;  %v277_v36 = vpop.f32.mrf.mxu1 }
 0x104   :  { %v403_v34 = vmul.f32 0.01, %v371_v26  ;;  %vm382_vm4 = vcmp.gt.f32.partialorder %v366_v31, 0.0  ;;  %v398_v37 = vmul.f32 0.01, %v366_v31  ;;  %vm390_vm5 = vcmp.gt.f32.partialorder %v374_v32, 0.0 }
 0x105   :  { %v406_v38 = vmul.f32 0.01, %v374_v32  ;;  %v411_v39 = vsel %vm379_vm2, %v363_v25, %v395_v33  ;;  %v364_v41 = vadd.f32 %v667_v16, %v245_v35  ;;  %v372_v42 = vadd.f32 %v667_v16, %v277_v36  ;;  %v516_v43 = vpop.f32.mrf.mxu0  ;;  %v524_v44 = vpop.f32.mrf.mxu1 }
 0x106   :  { %v419_v40 = vsel %vm387_vm3, %v371_v26, %v403_v34  ;;  %427 = vst [vmem:[#allocation8] sm:$0xff] %v411_v39  ;;  %v414_v45 = vsel %vm382_vm4, %v366_v31, %v398_v37  ;;  %v369_v47 = vadd.f32 %v516_v43, %v667_v16  ;;  %v377_v48 = vadd.f32 %v524_v44, %v667_v16 }
 0x107   :  { %435 = vst [vmem:[#allocation8 + $0x40] sm:$0xff] %v419_v40  ;;  %v422_v46 = vsel %vm390_vm5, %v374_v32, %v406_v38  ;;  %430 = vst [vmem:[#allocation8 + $0x18] sm:$0xff] %v414_v45  ;;  %vm380_vm6 = vcmp.gt.f32.partialorder %v364_v41, 0.0  ;;  %v396_v49 = vmul.f32 0.01, %v364_v41  ;;  %vm388_vm7 = vcmp.gt.f32.partialorder %v372_v42, 0.0  ;;  %v258_v51 = vpop.f32.mrf.mxu0  ;;  %v290_v52 = vpop.f32.mrf.mxu1 }
 0x108   :  { %438 = vst [vmem:[#allocation8 + $0x58] sm:$0xff] %v422_v46  ;;  %v404_v50 = vmul.f32 0.01, %v372_v42  ;;  %vm385_vm8 = vcmp.gt.f32.partialorder %v369_v47, 0.0  ;;  %v401_v53 = vmul.f32 0.01, %v369_v47  ;;  %v367_v57 = vadd.f32 %v667_v16, %v258_v51 }
 0x109   :  { %vm393_vm9 = vcmp.gt.f32.partialorder %v377_v48, 0.0  ;;  %v409_v54 = vmul.f32 0.01, %v377_v48  ;;  %v412_v55 = vsel %vm380_vm6, %v364_v41, %v396_v49  ;;  %v375_v58 = vadd.f32 %v667_v16, %v290_v52  ;;  %v517_v59 = vpop.f32.mrf.mxu0  ;;  %v525_v60 = vpop.f32.mrf.mxu1 }
 0x10a   :  { %v420_v56 = vsel %vm388_vm7, %v372_v42, %v404_v50  ;;  %428 = vst [vmem:[#allocation8 + $0x8] sm:$0xff] %v412_v55  ;;  %v417_v61 = vsel %vm385_vm8, %v369_v47, %v401_v53  ;;  %v370_v63 = vadd.f32 %v517_v59, %v667_v16  ;;  %v378_v0 = vadd.f32 %v525_v60, %v667_v16 }
 0x10b   :  { %436 = vst [vmem:[#allocation8 + $0x48] sm:$0xff] %v420_v56  ;;  %v425_v62 = vsel %vm393_vm9, %v377_v48, %v409_v54  ;;  %433 = vst [vmem:[#allocation8 + $0x30] sm:$0xff] %v417_v61  ;;  %vm383_vm10 = vcmp.gt.f32.partialorder %v367_v57, 0.0  ;;  %v399_v1 = vmul.f32 0.01, %v367_v57  ;;  %vm391_vm11 = vcmp.gt.f32.partialorder %v375_v58, 0.0  ;;  %v261_v3 = vpop.f32.mrf.mxu0  ;;  %v293_v4 = vpop.f32.mrf.mxu1 }
 0x10c   :  { %441 = vst [vmem:[#allocation8 + $0x70] sm:$0xff] %v425_v62  ;;  %v407_v2 = vmul.f32 0.01, %v375_v58  ;;  %vm386_vm12 = vcmp.gt.f32.partialorder %v370_v63, 0.0  ;;  %v402_v5 = vmul.f32 0.01, %v370_v63  ;;  %v368_v9 = vadd.f32 %v667_v16, %v261_v3 }
 0x10d   :  { %vm394_vm13 = vcmp.gt.f32.partialorder %v378_v0, 0.0  ;;  %v410_v6 = vmul.f32 0.01, %v378_v0  ;;  %v415_v7 = vsel %vm383_vm10, %v367_v57, %v399_v1  ;;  %v376_v10 = vadd.f32 %v667_v16, %v293_v4 }
 0x10e   :  { %v423_v8 = vsel %vm391_vm11, %v375_v58, %v407_v2  ;;  %431 = vst [vmem:[#allocation8 + $0x20] sm:$0xff] %v415_v7  ;;  %v418_v11 = vsel %vm386_vm12, %v370_v63, %v402_v5  ;;  %vm384_vm14 = vcmp.gt.f32.partialorder %v368_v9, 0.0  ;;  %v400_v13 = vmul.f32 0.01, %v368_v9 }
 0x10f   :  { %439 = vst [vmem:[#allocation8 + $0x60] sm:$0xff] %v423_v8  ;;  %v426_v12 = vsel %vm394_vm13, %v378_v0, %v410_v6  ;;  %434 = vst [vmem:[#allocation8 + $0x38] sm:$0xff] %v418_v11  ;;  %vm392_vm15 = vcmp.gt.f32.partialorder %v376_v10, 0.0  ;;  %v408_v14 = vmul.f32 0.01, %v376_v10 }
 0x110   :  { %442 = vst [vmem:[#allocation8 + $0x78] sm:$0xff] %v426_v12  ;;  %v416_v15 = vsel %vm384_vm14, %v368_v9, %v400_v13 }
 0x111   :  { %v424_v17 = vsel %vm392_vm15, %v376_v10, %v408_v14  ;;  %432 = vst [vmem:[#allocation8 + $0x28] sm:$0xff] %v416_v15 }
 0x112   :  { %440 = vst [vmem:[#allocation8 + $0x68] sm:$0xff] %v424_v17 }
 0x113   :  { %616 = shalt.err (!%p613_p0)
}
 0x114   :  { %s636_s26 = smov 128   ;;  %s637_s27 = smov 8  }
 0x115   :  { %454 = dma.vmem_to_hbm [thread:$0]  %s449_s24, 2048, %s691_s3, [#allocation5], %s636_s26, %s636_s26, %s637_s27  }
 0x116   :  { %629 = dma.done.wait [#allocation5], 2048  }
 0x117   :  { %630 = vsyncadd [#allocation5], 4294965248 }
 0x118   :  { %458 = vsyncpa [#allocation4], 1 }
 0x119   :  { %459 = vsyncpa [#allocation7], 1 }
 0x11a   :  { %460 = vsyncpa [#allocation5], 1 }

</bundles_post_ra>
